<compile_context>
chip_gen: v7x
topology: tpu7x:2x2x1
jax: 0.10.0
libtpu: 0.0.40
codegen_flags: <defaults>
</compile_context>

<pallas_src>
import jax
import jax.numpy as jnp
from jax.experimental import pallas as pl
from jax.experimental.pallas import tpu as pltpu

_LANE = 128
_SUBLANE = 8
_NEG_PAD = -1e30                        # padded classifier columns -> softmax == 0
_MAX_BATCH_TILE = 512                   # amortizes the ~0.35us/step grid overhead
_VMEM_BUDGET = 48 * 1024 * 1024         # conservative ceiling (fits v7x's 64 MiB)
_W_RESIDENT_BUDGET = 24 * 1024 * 1024   # double-buffered W above this -> tile latent dim


def _round_up(x: int, m: int) -> int:
    return ((x + m - 1) // m) * m


def _weight_assigner_kernel(z_ref, w_ref, b_ref, out_ref, acc_ref):
    """One (batch-tile, latent-tile) grid step of softmax(z @ W + b, axis=-1).

    Temperature is already folded into W / b.  Logits accumulate in f32 in
    `acc_ref`; the softmax is computed in-place on that scratch so only a
    single (tb, cp) f32 temporary stays live.
    """
    k = pl.program_id(1)

    # bf16 x bf16 -> f32 MXU matmul; the z cast happens on the VPU in-kernel.
    partial = jnp.dot(z_ref[...].astype(w_ref.dtype), w_ref[...],
                      preferred_element_type=jnp.float32)

    @pl.when(k == 0)
    def _():
        acc_ref[...] = partial

    @pl.when(k != 0)
    def _():
        acc_ref[...] = acc_ref[...] + partial

    @pl.when(k == pl.num_programs(1) - 1)
    def _():
        acc_ref[...] = acc_ref[...] + b_ref[...]            # logits (in place)
        m = jnp.max(acc_ref[...], axis=-1, keepdims=True)
        acc_ref[...] = jnp.exp(acc_ref[...] - m)            # exp (in place)
        denom = jnp.sum(acc_ref[...], axis=-1, keepdims=True)
        r = pl.reciprocal(denom, approx=True)               # EUP
        r = r * (2.0 - denom * r)                           # one Newton step
        out_ref[...] = (acc_ref[...] * r).astype(out_ref.dtype)


def prepare_weight_assigner_params(w, b, temperature=1.0,
                                   param_dtype=jnp.bfloat16):
    """One-time parameter transform (fold temperature, pad lanes, cast).

    Args:
      w: [latent_dim, num_classifiers]  (transposed from torch's [out, in]).
      b: [num_classifiers] or [1, num_classifiers].
      temperature: softmax temperature, folded into w and b here.
      param_dtype: storage dtype for W (bf16 recommended for the MXU).

    Returns:
      (w_padded [latent_dim, Cp] param_dtype, b_padded [1, Cp] float32),
      with Cp = round_up(num_classifiers, 128).
    """
    w = jnp.asarray(w, jnp.float32)
    b = jnp.asarray(b, jnp.float32).reshape(1, -1)
    inv_t = jnp.float32(1.0 / temperature)
    w = w * inv_t
    b = b * inv_t

    _, c = w.shape
    cp = _round_up(max(c, _LANE), _LANE)
    if cp != c:
        w = jnp.pad(w, ((0, 0), (0, cp - c)))
        b = jnp.pad(b, ((0, 0), (0, cp - c)), constant_values=_NEG_PAD)
    return w.astype(param_dtype), b


def weight_assigner_forward(z, w_prepared, b_prepared, num_classifiers,
                            out_dtype=jnp.bfloat16):
    """softmax((z @ W + b) / T, axis=-1) with T already folded into W, b."""
    batch, latent_dim = z.shape
    d, cp = w_prepared.shape
    assert d == latent_dim
    assert cp % _LANE == 0

    z_it = jnp.dtype(z.dtype).itemsize
    w_it = jnp.dtype(w_prepared.dtype).itemsize
    o_it = jnp.dtype(out_dtype).itemsize

    # ---- latent (reduction) tiling: only if a resident W would blow VMEM ----
    if 2 * d * cp * w_it > _W_RESIDENT_BUDGET and d % _LANE == 0:
        tk_cap = max(_LANE, (_W_RESIDENT_BUDGET // (2 * cp * w_it)) // _LANE * _LANE)
        tk = _LANE
        t = tk_cap
        while t >= _LANE:            # largest 128-multiple divisor of d within budget
            if d % t == 0:
                tk = t
                break
            t -= _LANE
    else:
        # TODO(synk): a huge latent_dim that is not a multiple of 128 stays
        # resident; pad the latent axis upstream if that ever overflows VMEM.
        tk = d
    n_k = pl.cdiv(d, tk)

    # ---- batch tiling: >=2 blocks when possible (both v7x TCs), capped at
    # _MAX_BATCH_TILE, shrunk against the VMEM budget.  Ragged last block is
    # handled by the grid (masked stores), no materialized pad. ----
    bp8 = _round_up(max(batch, 1), _SUBLANE)
    tb = max(_SUBLANE, min(_MAX_BATCH_TILE, _round_up(pl.cdiv(bp8, 2), _SUBLANE)))

    def vmem_need(tb_):
        return (2 * tb_ * tk * z_it      # z tile, double-buffered
                + 2 * tk * cp * w_it     # W tile, double-buffered
                + 2 * cp * 4             # bias, double-buffered
                + 2 * tb_ * cp * o_it    # out tile, double-buffered
                + tb_ * cp * 4           # f32 logits/exp scratch
                + 2 * tb_ * cp * 4)      # softmax temporaries headroom

    while vmem_need(tb) * 1.25 > _VMEM_BUDGET and tb > _SUBLANE:
        tb = max(_SUBLANE, _round_up(tb // 2, _SUBLANE))
    n_b = pl.cdiv(batch, tb)

    vmem_limit = int(min(max(int(vmem_need(tb) * 1.25), 8 * 1024 * 1024),
                         96 * 1024 * 1024))

    cost = pl.CostEstimate(
        flops=2 * batch * d * cp + 6 * batch * cp,
        transcendentals=batch * cp,
        bytes_accessed=(batch * d * z_it + n_b * d * cp * w_it + cp * 4
                        + batch * cp * o_it),
    )

    out = pl.pallas_call(
        _weight_assigner_kernel,
        out_shape=jax.ShapeDtypeStruct((batch, cp), out_dtype),
        grid_spec=pltpu.PrefetchScalarGridSpec(
            num_scalar_prefetch=0,
            grid=(n_b, n_k),
            in_specs=[
                pl.BlockSpec((tb, tk), lambda i, k: (i, k)),   # z: batch x latent tiles
                pl.BlockSpec((tk, cp), lambda i, k: (k, 0)),   # W: latent tiles, lane-dense
                pl.BlockSpec((1, cp), lambda i, k: (0, 0)),    # b: constant
            ],
            out_specs=pl.BlockSpec((tb, cp), lambda i, k: (i, 0)),
            scratch_shapes=[pltpu.VMEM((tb, cp), jnp.float32)],
        ),
        compiler_params=pltpu.CompilerParams(
            dimension_semantics=("parallel", "arbitrary"),
            vmem_limit_bytes=vmem_limit,
        ),
        cost_estimate=cost,
    )(z, w_prepared, b_prepared)

    # strip classifier-axis padding (batch axis is exact already)
    return out[:, :num_classifiers]


def reference_forward(z, w, b, temperature=1.0):
    logits = (z @ w + b.reshape(1, -1)) / temperature
    return jax.nn.softmax(logits, axis=-1)


if __name__ == "__main__":
    # Small shapes consistent with WeightAssigner(latent_dim, num_classifiers).
    # batch=10 (not a multiple of 8) exercises the ragged-edge masking and the
    # >=2-block batch grid.
    batch = 10
    latent_dim = 32
    num_classifiers = 16
    temperature = 2.0   # non-trivial temperature to exercise the fold

    key = jax.random.PRNGKey(0)
    kz, kw, kb = jax.random.split(key, 3)

    bound = float(latent_dim) ** -0.5   # PyTorch Linear-style uniform bound
    z = jax.random.normal(kz, (batch, latent_dim), dtype=jnp.float32)
    w = jax.random.uniform(kw, (latent_dim, num_classifiers), jnp.float32,
                           minval=-bound, maxval=bound)
    b = jax.random.uniform(kb, (num_classifiers,), jnp.float32,
                           minval=-bound, maxval=bound)

    w_p, b_p = prepare_weight_assigner_params(w, b, temperature)

    # default bf16 output (halved writeback) + f32 output for tight checks
    out_bf16 = jax.block_until_ready(
        weight_assigner_forward(z, w_p, b_p, num_classifiers))
    out_f32 = jax.block_until_ready(
        weight_assigner_forward(z, w_p, b_p, num_classifiers,
                                out_dtype=jnp.float32))

    assert out_bf16.shape == (batch, num_classifiers)
    assert out_bf16.dtype == jnp.bfloat16
    assert out_f32.shape == (batch, num_classifiers)

    # (1) Kernel fidelity: f32 reference built from the same prepared
    #     (temperature-folded, bf16-rounded) parameters and bf16-rounded z.
    z_q = z.astype(jnp.bfloat16).astype(jnp.float32)
    w_q = w_p[:, :num_classifiers].astype(jnp.float32)
    b_q = b_p[:, :num_classifiers]
    ref_exact = jax.nn.softmax(z_q @ w_q + b_q, axis=-1)
    assert jnp.allclose(out_f32, ref_exact, atol=1e-4, rtol=1e-4)
    assert jnp.allclose(out_bf16.astype(jnp.float32), ref_exact,
                        atol=1e-2, rtol=1e-2)

    # (2) Module-level semantics: softmax((z W + b)/T) in full f32; bf16 MXU
    #     input rounding bounds the gap.
    ref_f32 = reference_forward(z, w, b, temperature)
    assert jnp.allclose(out_f32, ref_f32, atol=2e-2, rtol=2e-2)

    # (3) rows are a probability distribution
    assert jnp.allclose(jnp.sum(out_f32, axis=-1),
                        jnp.ones((batch,), jnp.float32), atol=1e-4)
    assert jnp.allclose(jnp.sum(out_bf16.astype(jnp.float32), axis=-1),
                        jnp.ones((batch,), jnp.float32), atol=2e-2)

    print("KERNEL_OK")
</pallas_src>

<mosaic_0001>
module attributes {stable_mosaic.version = 11 : i64} {
  func.func @_weight_assigner_kernel(%arg0: i32, %arg1: i32, %arg2: memref<8x32xf32, #tpu.memory_space<vmem>>, %arg3: memref<32x128xbf16, #tpu.memory_space<vmem>>, %arg4: memref<1x128xf32, #tpu.memory_space<vmem>>, %arg5: memref<8x128xbf16, #tpu.memory_space<vmem>>, %arg6: memref<8x128xf32, #tpu.memory_space<vmem>>) attributes {dimension_semantics = [#tpu.dimension_semantics<parallel>, #tpu.dimension_semantics<arbitrary>], iteration_bounds = array<i64: 2, 1>, scalar_prefetch = 0 : i64, scratch_operands = 1 : i64, tpu.core_type = #tpu.core_type<tc>, window_params = [{transform_indices = @transform_0, window_bounds = array<i64: 8, 32>}, {transform_indices = @transform_1, window_bounds = array<i64: 32, 128>}, {pipeline_mode = #tpu.pipeline_mode<synchronous>, transform_indices = @transform_2, window_bounds = array<i64: 1, 128>}, {transform_indices = @transform_3, window_bounds = array<i64: 8, 128>}]} {
    %c0 = arith.constant 0 : index
    %c0_0 = arith.constant 0 : index
    %0 = vector.load %arg2[%c0, %c0_0] : memref<8x32xf32, #tpu.memory_space<vmem>>, vector<8x32xf32>
    %1 = arith.truncf %0 : vector<8x32xf32> to vector<8x32xbf16>
    %c0_1 = arith.constant 0 : index
    %c0_2 = arith.constant 0 : index
    %2 = vector.load %arg3[%c0_1, %c0_2] : memref<32x128xbf16, #tpu.memory_space<vmem>>, vector<32x128xbf16>
    %cst = arith.constant dense<0.000000e+00> : vector<8x128xf32>
    %3 = tpu.matmul %1, %2, %cst {dimension_numbers = #tpu.dot_dimension_numbers<[1], [0], [0], [1], [0, 0, 1, 1], [], []>} : vector<8x32xbf16>, vector<32x128xbf16>, vector<8x128xf32> -> vector<8x128xf32>
    %c0_i32 = arith.constant 0 : i32
    %4 = arith.cmpi eq, %arg1, %c0_i32 : i32
    %5 = arith.extui %4 : i1 to i32
    %c0_i32_3 = arith.constant 0 : i32
    %6 = arith.cmpi ne, %5, %c0_i32_3 : i32
    scf.if %6 {
      %c0_8 = arith.constant 0 : index
      %c0_9 = arith.constant 0 : index
      %13 = vector.load %arg6[%c0_8, %c0_9] : memref<8x128xf32, #tpu.memory_space<vmem>>, vector<8x128xf32>
      tpu.vector_store %arg6[%c0_8, %c0_9], %3 {strides = array<i32>} : memref<8x128xf32, #tpu.memory_space<vmem>>, vector<8x128xf32>,
    } else {
    }
    %c0_i32_4 = arith.constant 0 : i32
    %7 = arith.cmpi ne, %arg1, %c0_i32_4 : i32
    %8 = arith.extui %7 : i1 to i32
    %c0_i32_5 = arith.constant 0 : i32
    %9 = arith.cmpi ne, %8, %c0_i32_5 : i32
    scf.if %9 {
      %c0_8 = arith.constant 0 : index
      %c0_9 = arith.constant 0 : index
      %13 = vector.load %arg6[%c0_8, %c0_9] : memref<8x128xf32, #tpu.memory_space<vmem>>, vector<8x128xf32>
      %14 = arith.addf %13, %3 : vector<8x128xf32>
      %c0_10 = arith.constant 0 : index
      %c0_11 = arith.constant 0 : index
      %15 = vector.load %arg6[%c0_10, %c0_11] : memref<8x128xf32, #tpu.memory_space<vmem>>, vector<8x128xf32>
      tpu.vector_store %arg6[%c0_10, %c0_11], %14 {strides = array<i32>} : memref<8x128xf32, #tpu.memory_space<vmem>>, vector<8x128xf32>,
    } else {
    }
    %c0_i32_6 = arith.constant 0 : i32
    %10 = arith.cmpi eq, %arg1, %c0_i32_6 : i32
    %11 = arith.extui %10 : i1 to i32
    %c0_i32_7 = arith.constant 0 : i32
    %12 = arith.cmpi ne, %11, %c0_i32_7 : i32
    scf.if %12 {
      %c0_8 = arith.constant 0 : index
      %c0_9 = arith.constant 0 : index
      %13 = vector.load %arg6[%c0_8, %c0_9] : memref<8x128xf32, #tpu.memory_space<vmem>>, vector<8x128xf32>
      %c0_10 = arith.constant 0 : index
      %c0_11 = arith.constant 0 : index
      %14 = vector.load %arg4[%c0_10, %c0_11] : memref<1x128xf32, #tpu.memory_space<vmem>>, vector<1x128xf32>
      %15 = vector.broadcast %14 : vector<1x128xf32> to vector<8x128xf32>
      %16 = arith.addf %13, %15 : vector<8x128xf32>
      %c0_12 = arith.constant 0 : index
      %c0_13 = arith.constant 0 : index
      %17 = vector.load %arg6[%c0_12, %c0_13] : memref<8x128xf32, #tpu.memory_space<vmem>>, vector<8x128xf32>
      tpu.vector_store %arg6[%c0_12, %c0_13], %16 {strides = array<i32>} : memref<8x128xf32, #tpu.memory_space<vmem>>, vector<8x128xf32>,
      %c0_14 = arith.constant 0 : index
      %c0_15 = arith.constant 0 : index
      %18 = vector.load %arg6[%c0_14, %c0_15] : memref<8x128xf32, #tpu.memory_space<vmem>>, vector<8x128xf32>
      %cst_16 = arith.constant dense<0xFF800000> : vector<8xf32>
      %19 = vector.multi_reduction <maximumf>, %18, %cst_16 [1] : vector<8x128xf32> to vector<8xf32>
      %20 = vector.shape_cast %19 : vector<8xf32> to vector<8x1xf32>
      %c0_17 = arith.constant 0 : index
      %c0_18 = arith.constant 0 : index
      %21 = vector.load %arg6[%c0_17, %c0_18] : memref<8x128xf32, #tpu.memory_space<vmem>>, vector<8x128xf32>
      %22 = vector.broadcast %20 : vector<8x1xf32> to vector<8x128xf32>
      %23 = arith.subf %21, %22 : vector<8x128xf32>
      %24 = math.exp %23 : vector<8x128xf32>
      %c0_19 = arith.constant 0 : index
      %c0_20 = arith.constant 0 : index
      %25 = vector.load %arg6[%c0_19, %c0_20] : memref<8x128xf32, #tpu.memory_space<vmem>>, vector<8x128xf32>
      tpu.vector_store %arg6[%c0_19, %c0_20], %24 {strides = array<i32>} : memref<8x128xf32, #tpu.memory_space<vmem>>, vector<8x128xf32>,
      %c0_21 = arith.constant 0 : index
      %c0_22 = arith.constant 0 : index
      %26 = vector.load %arg6[%c0_21, %c0_22] : memref<8x128xf32, #tpu.memory_space<vmem>>, vector<8x128xf32>
      %cst_23 = arith.constant dense<0.000000e+00> : vector<8xf32>
      %27 = vector.multi_reduction <add>, %26, %cst_23 [1] : vector<8x128xf32> to vector<8xf32>
      %28 = vector.shape_cast %27 : vector<8xf32> to vector<8x1xf32>
      %29 = tpu.reciprocal %28 {approx = true} : vector<8x1xf32> -> vector<8x1xf32>
      %30 = arith.mulf %28, %29 : vector<8x1xf32>
      %cst_24 = arith.constant 2.000000e+00 : f32
      %31 = vector.broadcast %cst_24 : f32 to vector<8x1xf32>
      %32 = arith.subf %31, %30 : vector<8x1xf32>
      %33 = arith.mulf %29, %32 : vector<8x1xf32>
      %c0_25 = arith.constant 0 : index
      %c0_26 = arith.constant 0 : index
      %34 = vector.load %arg6[%c0_25, %c0_26] : memref<8x128xf32, #tpu.memory_space<vmem>>, vector<8x128xf32>
      %35 = vector.broadcast %33 : vector<8x1xf32> to vector<8x128xf32>
      %36 = arith.mulf %34, %35 : vector<8x128xf32>
      %37 = arith.truncf %36 : vector<8x128xf32> to vector<8x128xbf16>
      %c0_27 = arith.constant 0 : index
      %c0_28 = arith.constant 0 : index
      %38 = vector.load %arg5[%c0_27, %c0_28] : memref<8x128xbf16, #tpu.memory_space<vmem>>, vector<8x128xbf16>
      tpu.vector_store %arg5[%c0_27, %c0_28], %37 {strides = array<i32>} : memref<8x128xbf16, #tpu.memory_space<vmem>>, vector<8x128xbf16>,
    } else {
    }
    return
  }
  func.func @transform_0(%arg0: i32, %arg1: i32) -> (i32, i32) {
    %c0_i32 = arith.constant 0 : i32
    return %arg0, %arg1 : i32, i32
  }
  func.func @transform_1(%arg0: i32, %arg1: i32) -> (i32, i32) {
    %c0_i32 = arith.constant 0 : i32
    %c0_i32_0 = arith.constant 0 : i32
    return %arg1, %c0_i32 : i32, i32
  }
  func.func @transform_2(%arg0: i32, %arg1: i32) -> (i32, i32) {
    %c0_i32 = arith.constant 0 : i32
    %c0_i32_0 = arith.constant 0 : i32
    %c0_i32_1 = arith.constant 0 : i32
    return %c0_i32, %c0_i32_0 : i32, i32
  }
  func.func @transform_3(%arg0: i32, %arg1: i32) -> (i32, i32) {
    %c0_i32 = arith.constant 0 : i32
    %c0_i32_0 = arith.constant 0 : i32
    return %arg0, %c0_i32 : i32, i32
  }
}

</mosaic_0001>

<bundles_post_ra>
// kernel: tpu_custom_call.1
= control target key start
LH: loop header
LB: loop body
LE: loop exit
PB: predicated region body
PF: predicated region fallthrough
CT: control target
= control target key end

     0   :  { %8 = vsyncpa [#allocation4], 0  ;;  %s939_s0 = inlined_call_operand.hbm [shape: f32[10,32], index: 0, kind: input, shape index: {}]   ;;  %s940_s1 = inlined_call_operand.hbm [shape: bf16[32,128], index: 1, kind: input, shape index: {}]   ;;  %s941_s2 = inlined_call_operand.vmem [shape: f32[1,128], index: 2, kind: input, shape index: {}]   ;;  %s942_s3 = inlined_call_operand.hbm [shape: bf16[10,128], index: 3, kind: output, shape index: {}]  }
   0x1   :  { %10 = vsyncpa [#allocation4 + $0x1], 0 }
   0x2   :  { %11 = vsyncpa [#allocation7], 0 }
   0x3   :  { %12 = vsyncpa [#allocation5], 0 }
   0x4   :  { %14 = vsyncpa [#allocation5 + $0x1], 0  ;;  %s721_s12 = smov 0   ;;  %s723_s13 = smov 0  }
   0x5   :  { %s725_s14 = smov 0   ;;  %s727_s15 = smov 0  }
   0x6   :  { %s729_s16 = smov 0   ;;  %s731_s17 = smov 0  }
   0x7 LB: > { %s435_s18 = sadd.s32 4294967295, %s692_s17   ;;  %s436_s19 = sadd.s32 4294967294, %s692_s17   ;;  %s692_s17 = sphi %s731_s17, %s20_s17   ;;  %s688_s16 = sphi %s729_s16, %s966_s16   ;;  %s684_s15 = sphi %s727_s15, %s965_s15   ;;  %s680_s14 = sphi %s725_s14, %s964_s14   ;;  %s676_s13 = sphi %s723_s13, %s963_s13   ;;  %s672_s12 = sphi %s721_s12, %s962_s12  }
   0x8   : > { %p54_p0 = scmp.ne.s32.totalorder %s676_s13, %s672_s12  ;;  %p755_p1 = scmp.eq.s32.totalorder %s435_s18, 0 }
   0x9   : > { %p759_p2 = scmp.eq.s32.totalorder %s435_s18, 1  ;;  %p131_p3 = scmp.eq.s32.totalorder %s436_s19, 1 }
   0xa   : > { %s947_s20 = scalar_select %p755_p1, 1, 0 }
   0xb   : > { %s948_s21 = scalar_select %p759_p2, 1, 0 }
   0xc   : > { %p765_p4 = por %p755_p1, %p54_p0  ;;  %p437_p5 = scmp.ge.s32.totalorder %s692_s17, 1 }
   0xd   : > { %p770_p6 = por %p131_p3, %p54_p0  ;;  %p138_p7 = scmp.lt.s32.totalorder %s692_s17, 3 }
   0xe   : > { %s949_s22 = scalar_select %p765_p4, 1, 0 }
   0xf   : > { %s950_s23 = scalar_select %p770_p6, 1, 0 }
  0x10   : > { %p775_p8 = pnand %p437_p5, %p138_p7  ;;  %s694_s25 = smov [#allocation6]  }
  0x11   : > { %s153_s26 = sshll.u32 %s694_s25, 4  ;;  %s32_s28 = sadd.s32 1, %s688_s16  ;;  %s154_s26 = int_to_ptr.vmem [resolvable:$true] %s153_s26 }
  0x12   : > { %s951_s24 = scalar_select %p775_p8, 1, 0 }
  0x13   : > { %p473_p9 = pneg %p775_p8  ;;  %s548_s4 = scalar_lea.hbm %s940_s1, 256 }
  0x14   : > { %p549_p12 = scmp.ne.s32.totalorder %s940_s1, %s548_s4  ;;  %p555_p5 = scmp.lt.u32.totalorder %s548_s4, %s940_s1 }
  0x15   : > { %p784_p11 = pnand %p473_p9, %p755_p1 }
  0x17   : > { %p550_p13 = pneg %p784_p11 }
  0x19   : > { %p551_p0 = pnand %p550_p13, %p549_p12 }
  0x1b   : > { %p552_p3 = pneg %p551_p0 }
  0x1d   : > { %p557_p7 = pnand %p555_p5, %p552_p3 }
  0x1f   : > { %560 = shalt.err (!%p557_p7)
}
  0x20   : > { %s561_s9 = scalar_lea.vmem %s154_s26, 256  ;;  %p569_p1 = scmp.lt.s32.totalorder %s154_s26, %s154_s26 }
  0x21   : > { %p562_p9 = scmp.ne.s32.totalorder %s154_s26, %s561_s9  ;;  %p570_p4 = scmp.lt.s32.totalorder %s561_s9, %s561_s9 }
  0x23   : > { %p564_p10 = pnand %p562_p9, %p550_p13  ;;  %p571_p8 = por %p570_p4, %p569_p1 }
  0x25   : > { %p565_p6 = pneg %p564_p10 }
  0x27   : > { %p572_p2 = pnand %p571_p8, %p565_p6 }
  0x29   : > { %575 = shalt.err (!%p572_p2)
}
  0x2a   : > { %s695_s10 = smov 64   ;;  %s696_s11 = smov 4  }
  0x2b   : > { %476 = dma.hbm_to_vmem [thread:$0]  (!%p784_p11), %s940_s1, 256, %s154_s26, [#allocation7], %s695_s10, %s695_s10, %s696_s11  }
  0x2c   : > { %p34_p1 = scmp.ge.s32.totalorder %s32_s28, 2  ;;  %s41_s25 = sadd.s32 1, %s680_s14 }
  0x2d   : > { %p48_p2 = scmp.ne.s32.totalorder %s680_s14, %s676_s13  ;;  %p49_p4 = scmp.eq.s32.totalorder %s692_s17, 0 }
  0x2e   : > { %s968_s28 = smov (%p34_p1, %s32_s28), 0  ;;  %p954_p8 = scmp.ne.s32.totalorder %s948_s21, 0 }
  0x2f   : > { %p811_p6 = por %p49_p4, %p48_p2  ;;  %s36_s27 = ssub.s32 %s688_s16, %s968_s28 }
  0x30   : > { %p817_p10 = por %p954_p8, %p48_p2  ;;  %p486_p12 = scmp.lt.s32.totalorder %s692_s17, 2 }
  0x31   : > { %p39_p11 = scmp.eq.s32.totalorder %s36_s27, 0  ;;  %s170_s26 = sand.u32 1, %s680_s14  }
  0x32   : > { %s440_s4 = sshll.u32 %s170_s26, 3  ;;  %s441_s6 = sshll.u32 %s688_s16, 7 }
  0x33   : > { %s826_s5 = scalar_select %p39_p11, %s680_s14, %s41_s25  }
  0x34   : > { %s832_s9 = scalar_lea.hbm %s939_s0, %s441_s6  ;;  %s174_s21 = scalar_lea.vmem [#allocation3], %s440_s4 }
  0x35   : > { %s182_s10 = sshll.u32 %s174_s21, 4  ;;  %p838_p13 = pnand %p486_p12, %p811_p6  ;;  %s834_s10 = int_to_ptr.vmem [resolvable:$true] %s182_s10 }
  0x36   : > { %s171_s18 = scalar_lea.sflag [#allocation4], %s170_s26  ;;  %s576_s19 = scalar_lea.hbm %s832_s9, 128 }
  0x37   : > { %p577_p0 = scmp.ne.s32.totalorder %s832_s9, %s576_s19  ;;  %p578_p3 = pneg %p838_p13 }
  0x38   : > { %s581_s4 = scalar_lea.hbm %s939_s0, 256  ;;  %p582_p9 = scmp.lt.u32.totalorder %s832_s9, %s939_s0 }
  0x39   : > { %p579_p5 = pnand %p578_p3, %p577_p0  ;;  %p583_p1 = scmp.lt.u32.totalorder %s581_s4, %s576_s19 }
  0x3a   : > { %p585_p4 = scmp.lt.u32.totalorder %s576_s19, %s832_s9 }
  0x3b   : > { %p580_p7 = pneg %p579_p5  ;;  %p584_p2 = por %p583_p1, %p582_p9 }
  0x3d   : > { %p586_p6 = por %p585_p4, %p584_p2 }
  0x3f   : > { %p587_p8 = pnand %p586_p6, %p580_p7 }
  0x41   : > { %590 = shalt.err (!%p587_p8)
}
  0x42   : > { %s591_s26 = scalar_lea.vmem %s834_s10, 128  ;;  %s697_s7 = smov [#allocation3]  }
  0x43   : > { %p592_p12 = scmp.ne.s32.totalorder %s834_s10, %s591_s26  ;;  %s596_s8 = sshll.u32 %s697_s7, 4  ;;  %s597_s8 = int_to_ptr.vmem [resolvable:$false] %s596_s8 }
  0x44   : > { %s598_s21 = scalar_lea.vmem %s597_s8, 256  ;;  %p599_p5 = scmp.lt.s32.totalorder %s834_s10, %s597_s8 }
  0x45   : > { %p594_p11 = pnand %p592_p12, %p578_p3  ;;  %p600_p9 = scmp.lt.s32.totalorder %s598_s21, %s591_s26 }
  0x47   : > { %p595_p0 = pneg %p594_p11  ;;  %p601_p1 = por %p600_p9, %p599_p5 }
  0x49   : > { %p602_p2 = pnand %p601_p1, %p595_p0 }
  0x4b   : > { %605 = shalt.err (!%p602_p2)
}
  0x4c   : > { %480 = dma.hbm_to_vmem [thread:$0]  (!%p838_p13), %s832_s9, 128, %s834_s10, %s171_s18  }
  0x4d   : > { %p957_p7 = scmp.ne.s32.totalorder %s951_s24, 0 }
  0x4e   : > { %s870_s19 = sand.u32 (!%p957_p7), 1, %s676_s13   ;;  %p958_p3 = scmp.ne.s32.totalorder (!%p957_p7), %s949_s22, 0 }
  0x4f   : > { %191 = sbr.rel (%p957_p7) target bundleno = 647 (0x287), region = 32  ;;  %s443_s25 = sshll.u32 (!%p957_p7), %s870_s19, 3 }
  0x50   : > { %s194_s27 = scalar_lea.sflag (!%p957_p7), [#allocation4], %s870_s19  ;;  %s197_s4 = scalar_lea.vmem (!%p957_p7), [#allocation3], %s443_s25 }
  0x56   : > { %659 = dma.done.wait (%p958_p3), %s194_s27, 128  }
  0x57   : > { %661 = vsyncadd (%p958_p3), %s194_s27, 4294967168  ;;  %p959_p4 = scmp.ne.s32.totalorder %s947_s20, 0 }
  0x59   : > { %663 = dma.done.wait (%p959_p4), [#allocation7], 256  }
  0x5a   : > { %665 = vsyncadd (%p959_p4), [#allocation7], 4294967040  ;;  %v698_v0 = vmov 0.0   ;;  %vm699_vm0 = vmmov 0   ;;  %v542_v1 = vld [vmem:[#allocation6] sm:$0xff]   ;;  %v543_v2 = vld [vmem:[#allocation6 + $0x8] sm:$0xff]  }
  0x5b   : > { %457 = vmatprep.subr.bf16.mxu0 %v698_v0  ;;  %461 = vmatprep.mubr.msk.bf16.mxu0 %vm699_vm0, %v698_v0  ;;  %v226_v3 = vld [vmem:[%s197_s4] sm:$0xff]  ;;  %vm244_vm1 = vcmask 261120   ;;  %s445_s20 = sshll.u32 %s870_s19, 2  ;;  %s451_s9 = sshll.u32 %s684_s15, 6 }
  0x5c   : > { %458 = vmatpush3.bf16.msra.mxu0 %v542_v1  ;;  %v227_v4 = vpack.c.bf16 %v226_v3, %v226_v3  ;;  %v449_v5 = vld [vmem:[%s941_s2] ss:$0 sm:$0xff]  ;;  %s223_s10 = scalar_lea.vmem [#allocation8], %s445_s20  ;;  %s890_s6 = scalar_lea.hbm %s942_s3, %s451_s9 }
  0x5d   : > { %459 = vmatprep.subr.bf16.mxu0 %v698_v0  ;;  %s344_s11 = sshll.u32 %s223_s10, 4  ;;  %s331_s26 = scalar_lea.sflag [#allocation5], %s870_s19  ;;  %s892_s11 = int_to_ptr.vmem [resolvable:$true] %s344_s11 }
  0x5e   : > { %s606_s7 = scalar_lea.vmem %s892_s11, 64  ;;  %s700_s15 = smov [#allocation8]  }
  0x5f   : > { %p607_p13 = scmp.ne.s32.totalorder %s892_s11, %s606_s7  ;;  %s610_s8 = sshll.u32 %s700_s15, 4  ;;  %s611_s8 = int_to_ptr.vmem [resolvable:$false] %s610_s8 }
  0x60   : > { %460 = vmatpush3.bf16.msra.mxu0 %v543_v2  ;;  %s612_s21 = scalar_lea.vmem %s611_s8, 128  ;;  %p613_p12 = scmp.lt.s32.totalorder %s892_s11, %s611_s8 }
  0x61   : > { %p608_p6 = pnand %p607_p13, %p817_p10  ;;  %p614_p11 = scmp.lt.s32.totalorder %s612_s21, %s606_s7 }
  0x63   : > { %462 = vmatmul.mubr.msk.bf16.vlgmr.msra.gmra.mrb[0].mxu0 %vm244_vm1, %v227_v4  ;;  %p609_p8 = pneg %p608_p6  ;;  %p615_p0 = por %p614_p11, %p613_p12 }
  0x65   : > { %p616_p5 = pnand %p615_p0, %p609_p8 }
 0x136   : > { %v282_v6 = vpop.f32.mrb[0].mxu0 }
 0x137   : > { %v311_v7 = vadd.f32 %v449_v5, %v282_v6  ;;  %v463_v8 = vpop.f32.mrb[1].mxu0 }
 0x138   : > { %v285_v9 = vpop.f32.mrb[2].mxu0 }
 0x139   : > { %314 = vmax.xlane.f32.xlu0 %v311_v7  ;;  %v464_v10 = vpop.f32.mrb[3].mxu0 }
 0x1c6   : > { %v315_v11 = vpop.xlane.xlu0 %314 }
 0x1c7   : > { %v316_v12 = vsub.f32 %v311_v7, %v315_v11 }
 0x1c9   : > { %v317_v13 = vmul.f32 1.442695, %v316_v12 }
 0x1cb   : > { %544 = vpow2.f32 %v317_v13 }
 0x1d5   : > { %v545_v14 = vpop.eup %544 }
 0x1d6   : > { %321 = vadd.xlane.f32.xlu0 %v545_v14 }
 0x263   : > { %v322_v15 = vpop.xlane.xlu0 %321 }
 0x264   : > { %546 = vrcp.f32 %v322_v15 }
 0x26e   : > { %v547_v16 = vpop.eup %546 }
 0x26f   : > { %v324_v17 = vmul.f32 %v547_v16, %v322_v15 }
 0x271   : > { %v325_v18 = vsub.f32 2.0, %v324_v17 }
 0x273   : > { %v326_v19 = vmul.f32 %v547_v16, %v325_v18 }
 0x275   : > { %v327_v20 = vmul.f32 %v545_v14, %v326_v19 }
 0x277   : > { %v328_v21 = vpack.c.bf16 %v327_v20, %v327_v20 }
 0x279   : > { %329 = vst [vmem:[%s223_s10] sm:$0xf] %v328_v21 }
 0x27a   : > { %619 = shalt.err (!%p616_p5)
}
 0x27b   : > { %s620_s19 = scalar_lea.hbm %s890_s6, 64  ;;  %s624_s4 = scalar_lea.hbm %s942_s3, 128 }
 0x27c   : > { %p621_p9 = scmp.ne.s32.totalorder %s890_s6, %s620_s19  ;;  %p625_p7 = scmp.lt.u32.totalorder %s890_s6, %s942_s3 }
 0x27d   : > { %p626_p3 = scmp.lt.u32.totalorder %s624_s4, %s620_s19  ;;  %p628_p13 = scmp.lt.u32.totalorder %s620_s19, %s890_s6 }
 0x27e   : > { %p622_p1 = pnand %p621_p9, %p817_p10 }
 0x27f   : > { %p627_p4 = por %p626_p3, %p625_p7 }
 0x280   : > { %p623_p2 = pneg %p622_p1 }
 0x281   : > { %p629_p6 = por %p628_p13, %p627_p4 }
 0x283   : > { %p630_p8 = pnand %p629_p6, %p623_p2 }
 0x285   : > { %633 = shalt.err (!%p630_p8)
}
 0x286   : > { %471 = dma.vmem_to_hbm [thread:$0]  (%p817_p10), %s892_s11, 64, %s890_s6, %s331_s26  }
 0x287 PF: > { %s356_s20 = sand.u32 1, %s672_s12   ;;  %p960_p12 = scmp.ne.s32.totalorder %s950_s23, 0 }
 0x288   : > { %p961_p11 = scmp.ge.s32.totalorder %s692_s17, 2  ;;  %s357_s9 = scalar_lea.sflag [#allocation5], %s356_s20 }
 0x28a   : > { %p482_p0 = pnand %p961_p11, %p960_p12 }
 0x28c   : > { %667 = dma.done.wait (!%p482_p0), %s357_s9, 64  }
 0x28d   : > { %669 = vsyncadd (!%p482_p0), %s357_s9, 4294967232  ;;  %s20_s17 = sadd.s32 1, %s692_s17   ;;  %s962_s12 = smov %s676_s13 }
 0x28e   : > { %p17_p5 = scmp.ge.s32.totalorder %s20_s17, 4   ;;  %s963_s13 = smov %s680_s14 }
 0x28f   : > { %s964_s14 = smov %s826_s5  ;;  %s965_s15 = smov %s688_s16 }
 0x290   : > { %s966_s16 = smov %s968_s28  ;;  %19 = sbr.rel (!%p17_p5) target bundleno = 7 (0x7), region = 94 }
 0x297   :  { %362 = vsyncpa [#allocation4], 1 }
 0x298   :  { %364 = vsyncpa [#allocation4 + $0x1], 1 }
 0x299   :  { %365 = vsyncpa [#allocation7], 1 }
 0x29a   :  { %366 = vsyncpa [#allocation5], 1 }
 0x29b   :  { %368 = vsyncpa [#allocation5 + $0x1], 1 }

</bundles_post_ra>
